<compile_context>
chip_gen: v5e
topology: v5e:2x2
jax: 0.10.0
libtpu: 0.0.40
codegen_flags: <defaults>
</compile_context>

<pallas_src>
import functools

import jax
import jax.numpy as jnp
from jax.experimental import pallas as pl
from jax.experimental.pallas import tpu as pltpu


def _round_up(n, m):
    return ((n + m - 1) // m) * m


# ----------------------------------------------------------------------------
# Fused kernel: block-diagonal Linear -> Softplus -> DS-combination chain
# ----------------------------------------------------------------------------
def fused_forward_kernel(x_ref, w_ref, b_ref, evid_ref, ea_ref, *,
                         num_views, num_classes, abf):
    x = x_ref[...]                                   # (TB, D_total)  bf16
    w = w_ref[...]                                   # (D_total, V*C) bf16
    b = b_ref[...]                                   # (1, V*C)       f32

    # One MXU matmul covers every view's head (block-diagonal packed weights).
    y = jnp.dot(x, w, preferred_element_type=jnp.float32) + b

    # Numerically-stable softplus in f32: max(y,0) + log1p(exp(-|y|))
    ev = jnp.maximum(y, 0.0) + jnp.log1p(jnp.exp(-jnp.abs(y)))
    evid_ref[...] = ev                               # lane-dense [TB, V*C] slab

    C = num_classes
    K = jnp.float32(C)

    if abf:
        ea = ev[:, 0:C]
        for v in range(1, num_views):
            ea = (ev[:, v * C:(v + 1) * C] + ea) * 0.5
        ea_ref[...] = ea
        return

    def combin_two(a1, a2):
        # Dempster-Shafer combination of two Dirichlet alphas [TB, C].
        # bmm(b1[:,:,None], b2[:,None,:]) outer product reduces algebraically:
        #   full sum -> sum(b1)*sum(b2), diagonal sum -> sum(b1*b2).
        S1 = jnp.sum(a1, axis=1, keepdims=True)
        S2 = jnp.sum(a2, axis=1, keepdims=True)
        b1 = (a1 - 1.0) / S1
        b2 = (a2 - 1.0) / S2
        u1 = K / S1
        u2 = K / S2
        conflict = (jnp.sum(b1, axis=1, keepdims=True) *
                    jnp.sum(b2, axis=1, keepdims=True) -
                    jnp.sum(b1 * b2, axis=1, keepdims=True))
        denom = 1.0 - conflict
        b_a = (b1 * b2 + b1 * u2 + b2 * u1) / denom
        u_a = (u1 * u2) / denom
        S_a = K / u_a
        return b_a * S_a + 1.0                       # alpha_a = e_a + 1

    alpha_a = combin_two(ev[:, 0:C] + 1.0, ev[:, C:2 * C] + 1.0)
    for v in range(2, num_views):
        alpha_a = combin_two(alpha_a, ev[:, v * C:(v + 1) * C] + 1.0)
    ea_ref[...] = alpha_a - 1.0                      # evidence_a


@functools.partial(jax.jit,
                   static_argnames=("num_views", "num_classes", "abf", "tile_b"))
def fused_forward(x_cat, w_bd, b_all, *, num_views, num_classes, abf,
                  tile_b=512):
    B, Dt = x_cat.shape
    VC = num_views * num_classes

    tb = min(tile_b, _round_up(B, 8))                # multiple of 8
    Bp = _round_up(B, tb)
    if Bp != B:
        x_cat = jnp.pad(x_cat, ((0, Bp - B), (0, 0)))

    evid, ea = pl.pallas_call(
        functools.partial(fused_forward_kernel,
                          num_views=num_views, num_classes=num_classes, abf=abf),
        out_shape=(jax.ShapeDtypeStruct((Bp, VC), jnp.float32),
                   jax.ShapeDtypeStruct((Bp, num_classes), jnp.float32)),
        grid=(Bp // tb,),
        in_specs=[
            pl.BlockSpec((tb, Dt), lambda i: (i, 0)),      # batch-tiled x
            pl.BlockSpec((Dt, VC), lambda i: (0, 0)),      # VMEM-resident W
            pl.BlockSpec((1, VC), lambda i: (0, 0)),       # VMEM-resident bias
        ],
        out_specs=(
            pl.BlockSpec((tb, VC), lambda i: (i, 0)),      # packed evidences
            pl.BlockSpec((tb, num_classes), lambda i: (i, 0)),
        ),
        compiler_params=pltpu.CompilerParams(
            dimension_semantics=("parallel",)),
    )(x_cat, w_bd, b_all.reshape(1, VC))

    if Bp != B:
        evid = evid[:B]
        ea = ea[:B]
    return evid, ea


# ----------------------------------------------------------------------------
# Module wrapper
# ----------------------------------------------------------------------------
class MultiEvidenceCollectorPallas:
    def __init__(self, dims, num_classes, key):
        self.num_classes = num_classes
        self.dims = [int(d) for d in dims]
        self.num_views = len(self.dims)
        self.d_total = sum(self.dims)

        # Per-view params (kept in f32 for the reference check).
        self.params = []
        for d in self.dims:
            key, wk, bk = jax.random.split(key, 3)
            bound = 1.0 / jnp.sqrt(jnp.float32(d))
            w = jax.random.uniform(wk, (d, num_classes), jnp.float32, -bound, bound)
            b = jax.random.uniform(bk, (num_classes,), jnp.float32, -bound, bound)
            self.params.append((w, b))

        # Block-diagonal packed weights [sum(D_i), V*C] in bf16, bias [V*C] f32.
        C = num_classes
        w_bd = jnp.zeros((self.d_total, self.num_views * C), jnp.float32)
        b_all = jnp.zeros((self.num_views * C,), jnp.float32)
        row = 0
        for i, (w, b) in enumerate(self.params):
            d = self.dims[i]
            w_bd = w_bd.at[row:row + d, i * C:(i + 1) * C].set(w)
            b_all = b_all.at[i * C:(i + 1) * C].set(b)
            row += d
        self.w_bd = w_bd.astype(jnp.bfloat16)
        self.b_all = b_all

    def forward(self, x, abf=False):
        C = self.num_classes
        V = self.num_views
        # Concatenate views along the feature axis; cast to bf16 to halve the
        # HBM traffic into the kernel (f32 accumulation inside).
        x_cat = jnp.concatenate([xi.astype(jnp.bfloat16) for xi in x], axis=1)
        evid_all, evidence_a = fused_forward(
            x_cat, self.w_bd, self.b_all,
            num_views=V, num_classes=C, abf=abf)
        evidences = {i: evid_all[:, i * C:(i + 1) * C] for i in range(V)}
        return evidences, evidence_a


# ----------------------------------------------------------------------------
# Pure-JAX reference (matches kernel: bf16 matmul inputs, f32 accumulate)
# ----------------------------------------------------------------------------
def _ref_forward(model, x, abf=False):
    def softplus(y):
        return jnp.maximum(y, 0.0) + jnp.log1p(jnp.exp(-jnp.abs(y)))

    evid, alpha = {}, {}
    for i, (w, b) in enumerate(model.params):
        y = jnp.dot(x[i].astype(jnp.bfloat16), w.astype(jnp.bfloat16),
                    preferred_element_type=jnp.float32) + b
        evid[i] = softplus(y)
        alpha[i] = evid[i] + 1.0

    if abf:
        ea = evid[0]
        for i in range(1, len(model.params)):
            ea = (evid[i] + ea) / 2.0
        return evid, ea

    def combin_two(a1, a2):
        K = model.num_classes
        S1 = a1.sum(1, keepdims=True)
        S2 = a2.sum(1, keepdims=True)
        b1, b2 = (a1 - 1) / S1, (a2 - 1) / S2
        u1, u2 = K / S1, K / S2
        conflict = (b1.sum(1, keepdims=True) * b2.sum(1, keepdims=True)
                    - (b1 * b2).sum(1, keepdims=True))
        denom = 1.0 - conflict
        b_a = (b1 * b2 + b1 * u2 + b2 * u1) / denom
        u_a = u1 * u2 / denom
        return b_a * (K / u_a) + 1.0

    aa = combin_two(alpha[0], alpha[1])
    for v in range(1, len(alpha) - 1):
        aa = combin_two(aa, alpha[v + 1])
    return evid, aa - 1.0


if __name__ == "__main__":
    key = jax.random.PRNGKey(0)
    B = 8
    dims = [32, 16, 64]          # three views with different feature dims
    num_classes = 4

    key, pkey = jax.random.split(key)
    model = MultiEvidenceCollectorPallas(dims, num_classes, pkey)

    x = []
    for d in dims:
        key, xk = jax.random.split(key)
        x.append(jax.random.normal(xk, (B, d), jnp.float32))

    # Dempster-Shafer combination path
    evidences, evidence_a = model.forward(x, abf=False)
    evidence_a = jax.block_until_ready(evidence_a)
    for i in evidences:
        jax.block_until_ready(evidences[i])

    ref_evid, ref_ea = _ref_forward(model, x, abf=False)
    for i in ref_evid:
        assert jnp.allclose(evidences[i], ref_evid[i], atol=1e-4, rtol=1e-4), \
            f"evidence[{i}] mismatch vs reference"
    assert jnp.allclose(evidence_a, ref_ea, atol=1e-4, rtol=1e-4), \
        "evidence_a (DS) mismatch vs reference"

    # abf averaging path
    _, evidence_abf = model.forward(x, abf=True)
    evidence_abf = jax.block_until_ready(evidence_abf)
    _, ref_abf = _ref_forward(model, x, abf=True)
    assert jnp.allclose(evidence_abf, ref_abf, atol=1e-4, rtol=1e-4), \
        "evidence_a (abf) mismatch vs reference"

    print("KERNEL_OK")
</pallas_src>

<mosaic_0001>
module attributes {stable_mosaic.version = 11 : i64} {
  func.func @fused_forward_kernel(%arg0: i32, %arg1: memref<8x112xbf16, #tpu.memory_space<vmem>>, %arg2: memref<112x12xbf16, #tpu.memory_space<vmem>>, %arg3: memref<1x12xf32, #tpu.memory_space<vmem>>, %arg4: memref<8x12xf32, #tpu.memory_space<vmem>>, %arg5: memref<8x4xf32, #tpu.memory_space<vmem>>) attributes {dimension_semantics = [#tpu.dimension_semantics<parallel>], iteration_bounds = array<i64: 1>, scalar_prefetch = 0 : i64, scratch_operands = 0 : i64, tpu.core_type = #tpu.core_type<tc>, window_params = [{transform_indices = @transform_0, window_bounds = array<i64: 8, 112>}, {pipeline_mode = #tpu.pipeline_mode<synchronous>, transform_indices = @transform_1, window_bounds = array<i64: 112, 12>}, {pipeline_mode = #tpu.pipeline_mode<synchronous>, transform_indices = @transform_2, window_bounds = array<i64: 1, 12>}, {transform_indices = @transform_3, window_bounds = array<i64: 8, 12>}, {transform_indices = @transform_4, window_bounds = array<i64: 8, 4>}]} {
    %c0 = arith.constant 0 : index
    %c0_0 = arith.constant 0 : index
    %0 = vector.load %arg1[%c0, %c0_0] : memref<8x112xbf16, #tpu.memory_space<vmem>>, vector<8x112xbf16>
    %c0_1 = arith.constant 0 : index
    %c0_2 = arith.constant 0 : index
    %1 = vector.load %arg2[%c0_1, %c0_2] : memref<112x12xbf16, #tpu.memory_space<vmem>>, vector<112x12xbf16>
    %c0_3 = arith.constant 0 : index
    %c0_4 = arith.constant 0 : index
    %2 = vector.load %arg3[%c0_3, %c0_4] : memref<1x12xf32, #tpu.memory_space<vmem>>, vector<1x12xf32>
    %cst = arith.constant dense<0.000000e+00> : vector<8x12xf32>
    %3 = tpu.matmul %0, %1, %cst {dimension_numbers = #tpu.dot_dimension_numbers<[1], [0], [0], [1], [0, 0, 1, 1], [], []>} : vector<8x112xbf16>, vector<112x12xbf16>, vector<8x12xf32> -> vector<8x12xf32>
    %4 = vector.broadcast %2 : vector<1x12xf32> to vector<8x12xf32>
    %5 = arith.addf %3, %4 : vector<8x12xf32>
    %cst_5 = arith.constant 0.000000e+00 : f32
    %6 = vector.broadcast %cst_5 : f32 to vector<8x12xf32>
    %7 = arith.maximumf %5, %6 : vector<8x12xf32>
    %8 = math.absf %5 : vector<8x12xf32>
    %cst_6 = arith.constant 0.000000e+00 : f32
    %9 = vector.broadcast %cst_6 : f32 to vector<8x12xf32>
    %10 = arith.subf %9, %8 : vector<8x12xf32>
    %11 = math.exp %10 : vector<8x12xf32>
    %12 = math.log1p %11 : vector<8x12xf32>
    %13 = arith.addf %7, %12 : vector<8x12xf32>
    %c0_7 = arith.constant 0 : index
    %c0_8 = arith.constant 0 : index
    %14 = vector.load %arg4[%c0_7, %c0_8] : memref<8x12xf32, #tpu.memory_space<vmem>>, vector<8x12xf32>
    tpu.vector_store %arg4[%c0_7, %c0_8], %13 {strides = array<i32>} : memref<8x12xf32, #tpu.memory_space<vmem>>, vector<8x12xf32>,
    %15 = vector.extract_strided_slice %13 {offsets = [0, 0], sizes = [8, 4], strides = [1, 1]} : vector<8x12xf32> to vector<8x4xf32>
    %cst_9 = arith.constant 1.000000e+00 : f32
    %16 = vector.broadcast %cst_9 : f32 to vector<8x4xf32>
    %17 = arith.addf %15, %16 : vector<8x4xf32>
    %18 = vector.extract_strided_slice %13 {offsets = [0, 4], sizes = [8, 4], strides = [1, 1]} : vector<8x12xf32> to vector<8x4xf32>
    %cst_10 = arith.constant 1.000000e+00 : f32
    %19 = vector.broadcast %cst_10 : f32 to vector<8x4xf32>
    %20 = arith.addf %18, %19 : vector<8x4xf32>
    %cst_11 = arith.constant dense<0.000000e+00> : vector<8xf32>
    %21 = vector.multi_reduction <add>, %17, %cst_11 [1] : vector<8x4xf32> to vector<8xf32>
    %22 = vector.shape_cast %21 : vector<8xf32> to vector<8x1xf32>
    %cst_12 = arith.constant dense<0.000000e+00> : vector<8xf32>
    %23 = vector.multi_reduction <add>, %20, %cst_12 [1] : vector<8x4xf32> to vector<8xf32>
    %24 = vector.shape_cast %23 : vector<8xf32> to vector<8x1xf32>
    %cst_13 = arith.constant 1.000000e+00 : f32
    %25 = vector.broadcast %cst_13 : f32 to vector<8x4xf32>
    %26 = arith.subf %17, %25 : vector<8x4xf32>
    %27 = vector.broadcast %22 : vector<8x1xf32> to vector<8x4xf32>
    %28 = arith.divf %26, %27 : vector<8x4xf32>
    %cst_14 = arith.constant 1.000000e+00 : f32
    %29 = vector.broadcast %cst_14 : f32 to vector<8x4xf32>
    %30 = arith.subf %20, %29 : vector<8x4xf32>
    %31 = vector.broadcast %24 : vector<8x1xf32> to vector<8x4xf32>
    %32 = arith.divf %30, %31 : vector<8x4xf32>
    %cst_15 = arith.constant 4.000000e+00 : f32
    %33 = vector.broadcast %cst_15 : f32 to vector<8x1xf32>
    %34 = arith.divf %33, %22 : vector<8x1xf32>
    %cst_16 = arith.constant 4.000000e+00 : f32
    %35 = vector.broadcast %cst_16 : f32 to vector<8x1xf32>
    %36 = arith.divf %35, %24 : vector<8x1xf32>
    %cst_17 = arith.constant dense<0.000000e+00> : vector<8xf32>
    %37 = vector.multi_reduction <add>, %28, %cst_17 [1] : vector<8x4xf32> to vector<8xf32>
    %38 = vector.shape_cast %37 : vector<8xf32> to vector<8x1xf32>
    %cst_18 = arith.constant dense<0.000000e+00> : vector<8xf32>
    %39 = vector.multi_reduction <add>, %32, %cst_18 [1] : vector<8x4xf32> to vector<8xf32>
    %40 = vector.shape_cast %39 : vector<8xf32> to vector<8x1xf32>
    %41 = arith.mulf %38, %40 : vector<8x1xf32>
    %42 = arith.mulf %28, %32 : vector<8x4xf32>
    %cst_19 = arith.constant dense<0.000000e+00> : vector<8xf32>
    %43 = vector.multi_reduction <add>, %42, %cst_19 [1] : vector<8x4xf32> to vector<8xf32>
    %44 = vector.shape_cast %43 : vector<8xf32> to vector<8x1xf32>
    %45 = arith.subf %41, %44 : vector<8x1xf32>
    %cst_20 = arith.constant 1.000000e+00 : f32
    %46 = vector.broadcast %cst_20 : f32 to vector<8x1xf32>
    %47 = arith.subf %46, %45 : vector<8x1xf32>
    %48 = arith.mulf %28, %32 : vector<8x4xf32>
    %49 = vector.broadcast %36 : vector<8x1xf32> to vector<8x4xf32>
    %50 = arith.mulf %28, %49 : vector<8x4xf32>
    %51 = arith.addf %48, %50 : vector<8x4xf32>
    %52 = vector.broadcast %34 : vector<8x1xf32> to vector<8x4xf32>
    %53 = arith.mulf %32, %52 : vector<8x4xf32>
    %54 = arith.addf %51, %53 : vector<8x4xf32>
    %55 = vector.broadcast %47 : vector<8x1xf32> to vector<8x4xf32>
    %56 = arith.divf %54, %55 : vector<8x4xf32>
    %57 = arith.mulf %34, %36 : vector<8x1xf32>
    %58 = arith.divf %57, %47 : vector<8x1xf32>
    %cst_21 = arith.constant 4.000000e+00 : f32
    %59 = vector.broadcast %cst_21 : f32 to vector<8x1xf32>
    %60 = arith.divf %59, %58 : vector<8x1xf32>
    %61 = vector.broadcast %60 : vector<8x1xf32> to vector<8x4xf32>
    %62 = arith.mulf %56, %61 : vector<8x4xf32>
    %cst_22 = arith.constant 1.000000e+00 : f32
    %63 = vector.broadcast %cst_22 : f32 to vector<8x4xf32>
    %64 = arith.addf %62, %63 : vector<8x4xf32>
    %65 = vector.extract_strided_slice %13 {offsets = [0, 8], sizes = [8, 4], strides = [1, 1]} : vector<8x12xf32> to vector<8x4xf32>
    %cst_23 = arith.constant 1.000000e+00 : f32
    %66 = vector.broadcast %cst_23 : f32 to vector<8x4xf32>
    %67 = arith.addf %65, %66 : vector<8x4xf32>
    %cst_24 = arith.constant dense<0.000000e+00> : vector<8xf32>
    %68 = vector.multi_reduction <add>, %64, %cst_24 [1] : vector<8x4xf32> to vector<8xf32>
    %69 = vector.shape_cast %68 : vector<8xf32> to vector<8x1xf32>
    %cst_25 = arith.constant dense<0.000000e+00> : vector<8xf32>
    %70 = vector.multi_reduction <add>, %67, %cst_25 [1] : vector<8x4xf32> to vector<8xf32>
    %71 = vector.shape_cast %70 : vector<8xf32> to vector<8x1xf32>
    %cst_26 = arith.constant 1.000000e+00 : f32
    %72 = vector.broadcast %cst_26 : f32 to vector<8x4xf32>
    %73 = arith.subf %64, %72 : vector<8x4xf32>
    %74 = vector.broadcast %69 : vector<8x1xf32> to vector<8x4xf32>
    %75 = arith.divf %73, %74 : vector<8x4xf32>
    %cst_27 = arith.constant 1.000000e+00 : f32
    %76 = vector.broadcast %cst_27 : f32 to vector<8x4xf32>
    %77 = arith.subf %67, %76 : vector<8x4xf32>
    %78 = vector.broadcast %71 : vector<8x1xf32> to vector<8x4xf32>
    %79 = arith.divf %77, %78 : vector<8x4xf32>
    %cst_28 = arith.constant 4.000000e+00 : f32
    %80 = vector.broadcast %cst_28 : f32 to vector<8x1xf32>
    %81 = arith.divf %80, %69 : vector<8x1xf32>
    %cst_29 = arith.constant 4.000000e+00 : f32
    %82 = vector.broadcast %cst_29 : f32 to vector<8x1xf32>
    %83 = arith.divf %82, %71 : vector<8x1xf32>
    %cst_30 = arith.constant dense<0.000000e+00> : vector<8xf32>
    %84 = vector.multi_reduction <add>, %75, %cst_30 [1] : vector<8x4xf32> to vector<8xf32>
    %85 = vector.shape_cast %84 : vector<8xf32> to vector<8x1xf32>
    %cst_31 = arith.constant dense<0.000000e+00> : vector<8xf32>
    %86 = vector.multi_reduction <add>, %79, %cst_31 [1] : vector<8x4xf32> to vector<8xf32>
    %87 = vector.shape_cast %86 : vector<8xf32> to vector<8x1xf32>
    %88 = arith.mulf %85, %87 : vector<8x1xf32>
    %89 = arith.mulf %75, %79 : vector<8x4xf32>
    %cst_32 = arith.constant dense<0.000000e+00> : vector<8xf32>
    %90 = vector.multi_reduction <add>, %89, %cst_32 [1] : vector<8x4xf32> to vector<8xf32>
    %91 = vector.shape_cast %90 : vector<8xf32> to vector<8x1xf32>
    %92 = arith.subf %88, %91 : vector<8x1xf32>
    %cst_33 = arith.constant 1.000000e+00 : f32
    %93 = vector.broadcast %cst_33 : f32 to vector<8x1xf32>
    %94 = arith.subf %93, %92 : vector<8x1xf32>
    %95 = arith.mulf %75, %79 : vector<8x4xf32>
    %96 = vector.broadcast %83 : vector<8x1xf32> to vector<8x4xf32>
    %97 = arith.mulf %75, %96 : vector<8x4xf32>
    %98 = arith.addf %95, %97 : vector<8x4xf32>
    %99 = vector.broadcast %81 : vector<8x1xf32> to vector<8x4xf32>
    %100 = arith.mulf %79, %99 : vector<8x4xf32>
    %101 = arith.addf %98, %100 : vector<8x4xf32>
    %102 = vector.broadcast %94 : vector<8x1xf32> to vector<8x4xf32>
    %103 = arith.divf %101, %102 : vector<8x4xf32>
    %104 = arith.mulf %81, %83 : vector<8x1xf32>
    %105 = arith.divf %104, %94 : vector<8x1xf32>
    %cst_34 = arith.constant 4.000000e+00 : f32
    %106 = vector.broadcast %cst_34 : f32 to vector<8x1xf32>
    %107 = arith.divf %106, %105 : vector<8x1xf32>
    %108 = vector.broadcast %107 : vector<8x1xf32> to vector<8x4xf32>
    %109 = arith.mulf %103, %108 : vector<8x4xf32>
    %cst_35 = arith.constant 1.000000e+00 : f32
    %110 = vector.broadcast %cst_35 : f32 to vector<8x4xf32>
    %111 = arith.addf %109, %110 : vector<8x4xf32>
    %cst_36 = arith.constant 1.000000e+00 : f32
    %112 = vector.broadcast %cst_36 : f32 to vector<8x4xf32>
    %113 = arith.subf %111, %112 : vector<8x4xf32>
    %c0_37 = arith.constant 0 : index
    %c0_38 = arith.constant 0 : index
    %114 = vector.load %arg5[%c0_37, %c0_38] : memref<8x4xf32, #tpu.memory_space<vmem>>, vector<8x4xf32>
    tpu.vector_store %arg5[%c0_37, %c0_38], %113 {strides = array<i32>} : memref<8x4xf32, #tpu.memory_space<vmem>>, vector<8x4xf32>,
    return
  }
  func.func @transform_0(%arg0: i32) -> (i32, i32) {
    %c0_i32 = arith.constant 0 : i32
    %c0_i32_0 = arith.constant 0 : i32
    return %arg0, %c0_i32 : i32, i32
  }
  func.func @transform_1(%arg0: i32) -> (i32, i32) {
    %c0_i32 = arith.constant 0 : i32
    %c0_i32_0 = arith.constant 0 : i32
    %c0_i32_1 = arith.constant 0 : i32
    return %c0_i32, %c0_i32_0 : i32, i32
  }
  func.func @transform_2(%arg0: i32) -> (i32, i32) {
    %c0_i32 = arith.constant 0 : i32
    %c0_i32_0 = arith.constant 0 : i32
    %c0_i32_1 = arith.constant 0 : i32
    return %c0_i32, %c0_i32_0 : i32, i32
  }
  func.func @transform_3(%arg0: i32) -> (i32, i32) {
    %c0_i32 = arith.constant 0 : i32
    %c0_i32_0 = arith.constant 0 : i32
    return %arg0, %c0_i32 : i32, i32
  }
  func.func @transform_4(%arg0: i32) -> (i32, i32) {
    %c0_i32 = arith.constant 0 : i32
    %c0_i32_0 = arith.constant 0 : i32
    return %arg0, %c0_i32 : i32, i32
  }
}

</mosaic_0001>

<bundles_post_ra>
// kernel: fused_forward.1
= control target key start
LH: loop header
LB: loop body
LE: loop exit
PB: predicated region body
PF: predicated region fallthrough
CT: control target
= control target key end

     0   :  { %s512_s0 = inlined_call_operand.vmem [shape: bf16[8,112], index: 0, kind: input, shape index: {}]   ;;  %s513_s1 = inlined_call_operand.vmem [shape: bf16[112,12], index: 1, kind: input, shape index: {}]   ;;  %s514_s2 = inlined_call_operand.vmem [shape: f32[1,12], index: 2, kind: input, shape index: {}]   ;;  %s515_s3 = inlined_call_operand.hbm [shape: f32[8,12], index: 3, kind: output, shape index: {0}]   ;;  %s516_s4 = inlined_call_operand.vmem [shape: f32[8,4], index: 4, kind: output, shape index: {1}]  }
   0x1   :  { %v378_v0 = vld [vmem:[%s513_s1 + $0x30] sm:$0xff]  ;;  %v377_v1 = vld [vmem:[%s513_s1 + $0x28] sm:$0xff] }
   0x2   :  { %84 = vmatpush.bf16.msra.mxu0 %v378_v0 }
   0x3   :  { %10 = vsyncpa [#allocation3], 0  ;;  %v376_v2 = vld [vmem:[%s513_s1 + $0x20] sm:$0xff]  ;;  %v375_v3 = vld [vmem:[%s513_s1 + $0x18] sm:$0xff]  ;;  %vm79_vm0 = vcmask 916480   ;;  %vm111_vm2 = vcmask 97280  }
   0x4   :  { %v374_v4 = vld [vmem:[%s513_s1 + $0x10] sm:$0xff]  ;;  %v373_v5 = vld [vmem:[%s513_s1 + $0x8] sm:$0xff]  ;;  %v372_v6 = vld [vmem:[%s513_s1] sm:$0xff]  ;;  %vm114_vm3 = vcmask 31744   ;;  %s430_s1 = smov 120   ;;  %s327_s10 = sshll.u32 %s515_s3, 4  ;;  %s328_s10 = int_to_ptr.hbm [resolvable:$true] %s327_s10 }
   0x5   :  { %v18_v7 = vld [vmem:[%s512_s0] sm:$0xf]  ;;  %s429_s0 = smov 124  }
   0x6   :  { %85 = vmatpush.bf16.msra.mxu0 %v377_v1  ;;  %v382_v8 = vld [vmem:[%s514_s2] ss:$0 sm:$0xff]  ;;  %s431_s2 = smov [#allocation2]  }
   0x7   :  { %s325_s7 = sshll.u32 %s431_s2, 4  ;;  %s326_s7 = int_to_ptr.vmem [resolvable:$true] %s325_s7 }
   0xa   :  { %86 = vmatpush.bf16.msra.mxu0 %v376_v2 }
   0xe   :  { %87 = vmatpush.bf16.msra.mxu0 %v375_v3 }
  0x12   :  { %88 = vmatpush.bf16.msra.mxu0 %v374_v4 }
  0x16   :  { %89 = vmatpush.bf16.msra.mxu0 %v373_v5 }
  0x1a   :  { %90 = vmatpush.bf16.msra.mxu0 %v372_v6 }
  0x1d   :  { %368 = vmatmul.msk.bf16.vlgmr.msra.gmra.mxu0 %vm79_vm0, %v18_v7 }
  0x9a   :  { %v92_v9 = vpop.f32.mrf.mxu0 }
  0x9b   :  { %v93_v10 = vadd.f32 %v382_v8, %v92_v9 }
  0x9d   :  { %v97_v11 = vand.u32 2147483647, %v93_v10  ;;  %v96_v23 = vmax.f32 %v93_v10, 0.0 }
  0x9f   :  { %v98_v12 = vsub.f32 0.0, %v97_v11 }
  0xa1   :  { %v99_v13 = vmul.f32 1.442695, %v98_v12 }
  0xa2   :  { %v94_v14 = vpop.f32.mrf.mxu0 }
  0xa3   :  { %383 = vpow2.f32 %v99_v13 }
  0xa9   :  { %v384_v15 = vpop.eup %383 }
  0xaa   :  { %v101_v16 = vadd.f32 1.0, %v384_v15  ;;  %v104_v17 = vmul.f32 -0.5, %v384_v15  ;;  %v107_v19 = vand.u32 2147483647, %v384_v15 }
  0xac   :  { %385 = vlog2.f32 %v101_v16  ;;  %v105_v18 = vadd.f32 1.0, %v104_v17  ;;  %vm108_vm1 = vcmp.lt.f32.partialorder %v107_v19, 0.0004427343 }
  0xae   :  { %v106_v22 = vmul.f32 %v384_v15, %v105_v18 }
  0xb2   :  { %v386_v20 = vpop.eup %385 }
  0xb3   :  { %v103_v21 = vmul.f32 0.6931472, %v386_v20 }
  0xb5   :  { %v109_v24 = vsel %vm108_vm1, %v106_v22, %v103_v21 }
  0xb6   :  { %v110_v25 = vadd.f32 %v109_v24, %v96_v23 }
  0xb8   :  { %v113_v26 = vadd.f32 1.0, %v110_v25  ;;  %112 = vst.msk [vmem:[#allocation2] sm:$0xff] %vm111_vm2, %v110_v25 }
  0xb9   :  { %330 = dma.vmem_to_hbm [thread:$0]  %s326_s7, 128, %s328_s10, [#allocation3]  }
  0xba   :  { %119 = vrot.lane.b32.xlu0 %v113_v26, %s429_s0  ;;  %v115_v27 = vsel %vm114_vm3, %v113_v26, 0.0  ;;  %v487_v39 = vadd.f32 -1.0, %v113_v26 }
  0xbb   :  { %116 = vadd.xlane.f32.xlu1 %v115_v27 }
 0x12c   :  { %v120_v28 = vpop.permute.xlu0 %119 }
 0x12d   :  { %v122_v29 = vsel %vm114_vm3, %v120_v28, 0.0 }
 0x12e   :  { %123 = vadd.xlane.f32.xlu0 %v122_v29  ;;  %v117_v30 = vpop.xlane.xlu1 %116 }
 0x12f   :  { %387 = vrcp.f32 %v117_v30  ;;  %v137_v34 = vand.u32 2147483648, %v117_v30  ;;  %v135_v36 = vand.u32 2147483647, %v117_v30  ;;  %vm131_vm5 = vweird.f32 %v117_v30 }
 0x131   :  { %v138_v38 = vor.u32 1.1754944e-38, %v137_v34  ;;  %vm136_vm7 = vcmp.eq.f32.partialorder %v135_v36, 8.507059e+37 }
 0x135   :  { %v388_v31 = vpop.eup %387 }
 0x136   :  { %v127_v32 = vmul.f32 %v388_v31, %v117_v30  ;;  %vm132_vm4 = vweird.f32 %v388_v31 }
 0x137   :  { %vm133_vm6 = vmor %vm131_vm5, %vm132_vm4 }
 0x138   :  { %v128_v33 = vsub.f32 1.0, %v127_v32 }
 0x13a   :  { %v129_v35 = vmul.f32 %v388_v31, %v128_v33 }
 0x13c   :  { %v130_v37 = vadd.f32 %v388_v31, %v129_v35 }
 0x13e   :  { %v134_v40 = vsel %vm133_vm6, %v388_v31, %v130_v37 }
 0x13f   :  { %v139_v41 = vsel %vm136_vm7, %v138_v38, %v134_v40 }
 0x140   :  { %v140_v42 = vmul.f32 %v487_v39, %v139_v41  ;;  %v156_v57 = vmul.f32 4.0, %v139_v41 }
 0x142   :  { %v158_v43 = vsel %vm114_vm3, %v140_v42, 0.0 }
 0x143   :  { %159 = vadd.xlane.f32.xlu2 %v158_v43 }
 0x1a1   :  { %v124_v44 = vpop.xlane.xlu0 %123 }
 0x1a2   :  { %389 = vrcp.f32 %v124_v44  ;;  %v152_v48 = vand.u32 2147483648, %v124_v44  ;;  %v150_v50 = vand.u32 2147483647, %v124_v44  ;;  %vm146_vm9 = vweird.f32 %v124_v44 }
 0x1a4   :  { %v153_v52 = vor.u32 1.1754944e-38, %v152_v48  ;;  %vm151_vm11 = vcmp.eq.f32.partialorder %v150_v50, 8.507059e+37 }
 0x1a8   :  { %v390_v45 = vpop.eup %389 }
 0x1a9   :  { %v142_v46 = vmul.f32 %v390_v45, %v124_v44  ;;  %vm147_vm8 = vweird.f32 %v390_v45 }
 0x1aa   :  { %vm148_vm10 = vmor %vm146_vm9, %vm147_vm8 }
 0x1ab   :  { %v143_v47 = vsub.f32 1.0, %v142_v46 }
 0x1ad   :  { %v144_v49 = vmul.f32 %v390_v45, %v143_v47 }
 0x1af   :  { %v145_v51 = vadd.f32 %v390_v45, %v144_v49 }
 0x1b1   :  { %v149_v53 = vsel %vm148_vm10, %v390_v45, %v145_v51 }
 0x1b2   :  { %v154_v54 = vsel %vm151_vm11, %v153_v52, %v149_v53 }
 0x1b3   :  { %v155_v55 = vmul.f32 %v487_v39, %v154_v54  ;;  %v157_v56 = vmul.f32 4.0, %v154_v54 }
 0x1b5   :  { %162 = vrot.lane.b32.xlu1 %v155_v55, %s429_s0  ;;  %v198_v58 = vmul.f32 %v157_v56, %v156_v57  ;;  %v177_v59 = vmul.f32 %v156_v57, %v155_v55  ;;  %v175_v63 = vmul.f32 %v157_v56, %v140_v42 }
 0x1b6   :  { %v160_v2 = vpop.xlane.xlu2 %159 }
 0x1bd   :  { %179 = vrot.lane.b32.xlu1 %v177_v59, %s429_s0 }
 0x227   :  { %v163_v60 = vpop.permute.xlu1 %162 }
 0x228   :  { %v169_v61 = vmul.f32 %v163_v60, %v140_v42  ;;  %v165_v62 = vsel %vm114_vm3, %v163_v60, 0.0 }
 0x229   :  { %166 = vadd.xlane.f32.xlu2 %v165_v62 }
 0x22a   :  { %v176_v0 = vadd.f32 %v175_v63, %v169_v61  ;;  %v170_v1 = vsel %vm114_vm3, %v169_v61, 0.0 }
 0x22f   :  { %v180_v27 = vpop.permute.xlu1 %179 }
 0x230   :  { %v182_v30 = vadd.f32 %v180_v27, %v176_v0 }
 0x231   :  { %171 = vadd.xlane.f32.xlu2 %v170_v1 }
 0x249   :  { %220 = vrot.lane.b32.xlu2 %v113_v26, %s430_s1 }
 0x29c   :  { %v167_v3 = vpop.xlane.xlu2 %166 }
 0x29d   :  { %v168_v4 = vmul.f32 %v167_v3, %v160_v2 }
 0x2a4   :  { %v172_v5 = vpop.xlane.xlu2 %171 }
 0x2a5   :  { %v173_v6 = vsub.f32 %v168_v4, %v172_v5 }
 0x2a7   :  { %v174_v7 = vsub.f32 1.0, %v173_v6 }
 0x2a9   :  { %391 = vrcp.f32 %v174_v7  ;;  %v194_v13 = vand.u32 2147483648, %v174_v7  ;;  %v192_v15 = vand.u32 2147483647, %v174_v7  ;;  %vm188_vm13 = vweird.f32 %v174_v7 }
 0x2ab   :  { %v195_v17 = vor.u32 1.1754944e-38, %v194_v13  ;;  %vm193_vm15 = vcmp.eq.f32.partialorder %v192_v15, 8.507059e+37 }
 0x2ac   :  { %v221_v8 = vpop.permute.xlu2 %220 }
 0x2ad   :  { %v223_v9 = vsel %vm114_vm3, %v221_v8, 0.0 }
 0x2ae   :  { %224 = vadd.xlane.f32.xlu1 %v223_v9 }
 0x2af   :  { %v392_v10 = vpop.eup %391 }
 0x2b0   :  { %v184_v11 = vmul.f32 %v392_v10, %v174_v7  ;;  %vm189_vm12 = vweird.f32 %v392_v10 }
 0x2b1   :  { %vm190_vm14 = vmor %vm188_vm13, %vm189_vm12 }
 0x2b2   :  { %v185_v12 = vsub.f32 1.0, %v184_v11 }
 0x2b4   :  { %v186_v14 = vmul.f32 %v392_v10, %v185_v12 }
 0x2b6   :  { %v187_v16 = vadd.f32 %v392_v10, %v186_v14 }
 0x2b8   :  { %v191_v18 = vsel %vm190_vm14, %v392_v10, %v187_v16 }
 0x2b9   :  { %v196_v19 = vsel %vm193_vm15, %v195_v17, %v191_v18 }
 0x2ba   :  { %v199_v20 = vmul.f32 %v198_v58, %v196_v19  ;;  %v197_v33 = vmul.f32 %v196_v19, %v182_v30 }
 0x2bc   :  { %393 = vrcp.f32 %v199_v20  ;;  %v211_v24 = vand.u32 2147483648, %v199_v20  ;;  %v209_v26 = vand.u32 2147483647, %v199_v20  ;;  %vm205_vm1 = vweird.f32 %v199_v20 }
 0x2be   :  { %v212_v29 = vor.u32 1.1754944e-38, %v211_v24  ;;  %vm210_vm4 = vcmp.eq.f32.partialorder %v209_v26, 8.507059e+37 }
 0x2c2   :  { %v394_v21 = vpop.eup %393 }
 0x2c3   :  { %v201_v22 = vmul.f32 %v394_v21, %v199_v20  ;;  %vm206_vm0 = vweird.f32 %v394_v21 }
 0x2c4   :  { %vm207_vm2 = vmor %vm205_vm1, %vm206_vm0 }
 0x2c5   :  { %v202_v23 = vsub.f32 1.0, %v201_v22 }
 0x2c7   :  { %v203_v25 = vmul.f32 %v394_v21, %v202_v23 }
 0x2c9   :  { %v204_v28 = vadd.f32 %v394_v21, %v203_v25 }
 0x2cb   :  { %v208_v31 = vsel %vm207_vm2, %v394_v21, %v204_v28 }
 0x2cc   :  { %v213_v32 = vsel %vm210_vm4, %v212_v29, %v208_v31 }
 0x2cd   :  { %v214_v34 = vmul.f32 4.0, %v213_v32 }
 0x2cf   :  { %v215_v35 = vmul.f32 %v214_v34, %v197_v33 }
 0x2d1   :  { %v216_v36 = vadd.f32 1.0, %v215_v35 }
 0x2d3   :  { %v217_v37 = vsel %vm114_vm3, %v216_v36, 0.0  ;;  %v370_v61 = vadd.f32 -1.0, %v216_v36 }
 0x2d4   :  { %218 = vadd.xlane.f32.xlu2 %v217_v37 }
 0x321   :  { %v225_v38 = vpop.xlane.xlu1 %224 }
 0x322   :  { %395 = vrcp.f32 %v225_v38  ;;  %v253_v43 = vand.u32 2147483648, %v225_v38  ;;  %v251_v45 = vand.u32 2147483647, %v225_v38  ;;  %vm247_vm6 = vweird.f32 %v225_v38 }
 0x324   :  { %v254_v47 = vor.u32 1.1754944e-38, %v253_v43  ;;  %vm252_vm8 = vcmp.eq.f32.partialorder %v251_v45, 8.507059e+37 }
 0x328   :  { %v396_v40 = vpop.eup %395 }
 0x329   :  { %v243_v41 = vmul.f32 %v396_v40, %v225_v38  ;;  %vm248_vm5 = vweird.f32 %v396_v40 }
 0x32a   :  { %vm249_vm7 = vmor %vm247_vm6, %vm248_vm5 }
 0x32b   :  { %v244_v42 = vsub.f32 1.0, %v243_v41 }
 0x32d   :  { %v245_v44 = vmul.f32 %v396_v40, %v244_v42 }
 0x32f   :  { %v246_v46 = vadd.f32 %v396_v40, %v245_v44 }
 0x331   :  { %v250_v48 = vsel %vm249_vm7, %v396_v40, %v246_v46 }
 0x332   :  { %v255_v49 = vsel %vm252_vm8, %v254_v47, %v250_v48 }
 0x333   :  { %v256_v50 = vmul.f32 %v487_v39, %v255_v49  ;;  %v258_v39 = vmul.f32 4.0, %v255_v49 }
 0x335   :  { %263 = vrot.lane.b32.xlu0 %v256_v50, %s430_s1 }
 0x347   :  { %v219_v51 = vpop.xlane.xlu2 %218 }
 0x348   :  { %397 = vrcp.f32 %v219_v51  ;;  %v238_v55 = vand.u32 2147483648, %v219_v51  ;;  %v236_v57 = vand.u32 2147483647, %v219_v51  ;;  %vm232_vm10 = vweird.f32 %v219_v51 }
 0x34a   :  { %v239_v59 = vor.u32 1.1754944e-38, %v238_v55  ;;  %vm237_vm12 = vcmp.eq.f32.partialorder %v236_v57, 8.507059e+37 }
 0x34e   :  { %v398_v52 = vpop.eup %397 }
 0x34f   :  { %v228_v53 = vmul.f32 %v398_v52, %v219_v51  ;;  %vm233_vm9 = vweird.f32 %v398_v52 }
 0x350   :  { %vm234_vm11 = vmor %vm232_vm10, %vm233_vm9 }
 0x351   :  { %v229_v54 = vsub.f32 1.0, %v228_v53 }
 0x353   :  { %v230_v56 = vmul.f32 %v398_v52, %v229_v54 }
 0x355   :  { %v231_v58 = vadd.f32 %v398_v52, %v230_v56 }
 0x357   :  { %v235_v60 = vsel %vm234_vm11, %v398_v52, %v231_v58 }
 0x358   :  { %v240_v62 = vsel %vm237_vm12, %v239_v59, %v235_v60 }
 0x359   :  { %v257_v63 = vmul.f32 4.0, %v240_v62  ;;  %v241_v0 = vmul.f32 %v370_v61, %v240_v62 }
 0x35b   :  { %v278_v1 = vmul.f32 %v257_v63, %v256_v50  ;;  %v299_v2 = vmul.f32 %v258_v39, %v257_v63  ;;  %v259_v3 = vsel %vm114_vm3, %v241_v0, 0.0  ;;  %v276_v7 = vmul.f32 %v258_v39, %v241_v0 }
 0x35f   :  { %260 = vadd.xlane.f32.xlu0 %v259_v3 }
 0x3a7   :  { %v264_v4 = vpop.permute.xlu0 %263 }
 0x3a8   :  { %v270_v5 = vmul.f32 %v264_v4, %v241_v0  ;;  %v266_v6 = vsel %vm114_vm3, %v264_v4, 0.0 }
 0x3a9   :  { %267 = vadd.xlane.f32.xlu1 %v266_v6 }
 0x3aa   :  { %v271_v8 = vsel %vm114_vm3, %v270_v5, 0.0  ;;  %v277_v9 = vadd.f32 %v276_v7, %v270_v5 }
 0x3ab   :  { %272 = vadd.xlane.f32.xlu2 %v271_v8 }
 0x3c2   :  { %280 = vrot.lane.b32.xlu1 %v278_v1, %s430_s1 }
 0x3d2   :  { %v261_v10 = vpop.xlane.xlu0 %260 }
 0x41c   :  { %v268_v11 = vpop.xlane.xlu1 %267 }
 0x41d   :  { %v269_v12 = vmul.f32 %v268_v11, %v261_v10 }
 0x41e   :  { %v273_v13 = vpop.xlane.xlu2 %272 }
 0x41f   :  { %v274_v14 = vsub.f32 %v269_v12, %v273_v13 }
 0x421   :  { %v275_v15 = vsub.f32 1.0, %v274_v14 }
 0x423   :  { %399 = vrcp.f32 %v275_v15  ;;  %v295_v19 = vand.u32 2147483648, %v275_v15  ;;  %v293_v21 = vand.u32 2147483647, %v275_v15  ;;  %vm289_vm14 = vweird.f32 %v275_v15 }
 0x425   :  { %v296_v23 = vor.u32 1.1754944e-38, %v295_v19  ;;  %vm294_vm0 = vcmp.eq.f32.partialorder %v293_v21, 8.507059e+37 }
 0x429   :  { %v400_v16 = vpop.eup %399 }
 0x42a   :  { %v285_v17 = vmul.f32 %v400_v16, %v275_v15  ;;  %vm290_vm13 = vweird.f32 %v400_v16 }
 0x42b   :  { %vm291_vm15 = vmor %vm289_vm14, %vm290_vm13 }
 0x42c   :  { %v286_v18 = vsub.f32 1.0, %v285_v17 }
 0x42e   :  { %v287_v20 = vmul.f32 %v400_v16, %v286_v18 }
 0x430   :  { %v288_v22 = vadd.f32 %v400_v16, %v287_v20 }
 0x432   :  { %v292_v24 = vsel %vm291_vm15, %v400_v16, %v288_v22 }
 0x433   :  { %v297_v25 = vsel %vm294_vm0, %v296_v23, %v292_v24 }
 0x434   :  { %v300_v26 = vmul.f32 %v299_v2, %v297_v25  ;;  %v281_v31 = vpop.permute.xlu1 %280 }
 0x435   :  { %v283_v35 = vadd.f32 %v281_v31, %v277_v9 }
 0x436   :  { %401 = vrcp.f32 %v300_v26  ;;  %v312_v30 = vand.u32 2147483648, %v300_v26  ;;  %v310_v33 = vand.u32 2147483647, %v300_v26  ;;  %vm306_vm2 = vweird.f32 %v300_v26 }
 0x437   :  { %v298_v41 = vmul.f32 %v297_v25, %v283_v35 }
 0x438   :  { %v313_v36 = vor.u32 1.1754944e-38, %v312_v30  ;;  %vm311_vm5 = vcmp.eq.f32.partialorder %v310_v33, 8.507059e+37 }
 0x43c   :  { %v402_v27 = vpop.eup %401 }
 0x43d   :  { %v302_v28 = vmul.f32 %v402_v27, %v300_v26  ;;  %vm307_vm1 = vweird.f32 %v402_v27 }
 0x43e   :  { %vm308_vm4 = vmor %vm306_vm2, %vm307_vm1 }
 0x43f   :  { %v303_v29 = vsub.f32 1.0, %v302_v28 }
 0x441   :  { %v304_v32 = vmul.f32 %v402_v27, %v303_v29 }
 0x443   :  { %v305_v34 = vadd.f32 %v402_v27, %v304_v32 }
 0x445   :  { %v309_v37 = vsel %vm308_vm4, %v402_v27, %v305_v34 }
 0x446   :  { %v314_v38 = vsel %vm311_vm5, %v313_v36, %v309_v37 }
 0x447   :  { %v315_v40 = vmul.f32 4.0, %v314_v38 }
 0x449   :  { %v316_v42 = vmul.f32 %v315_v40, %v298_v41 }
 0x44b   :  { %v317_v43 = vadd.f32 1.0, %v316_v42 }
 0x44d   :  { %v371_v44 = vadd.f32 -1.0, %v317_v43 }
 0x44f   :  { %319 = vst.msk [vmem:[%s516_s4] sm:$0xff] %vm114_vm3, %v371_v44 }
 0x450   :  { %427 = dma.done.wait [#allocation3], 128  }
 0x451   :  { %428 = vsyncadd [#allocation3], 4294967168 }
 0x452   :  { %339 = vsyncpa [#allocation3], 1 }

</bundles_post_ra>
